<compile_context>
chip_gen: v6e
topology: v6e:2x2x1
jax: 0.10.0
libtpu: 0.0.40
codegen_flags: <defaults>
</compile_context>

<pallas_src>
import functools

import numpy as np
import jax
import jax.numpy as jnp
from jax.experimental import pallas as pl
from jax.experimental.pallas import tpu as pltpu


# ----------------------------------------------------------------------------------
# Fused recurrence kernel: one grid step == one timestep (in processing order)
# ----------------------------------------------------------------------------------

def _lattice_kernel(nin_ref, slots_ref,                       # scalar prefetch (SMEM)
                    init_ref, wi_ref, awi_ref, wwi_ref,       # per-step / init inputs
                    whh_ref, awhh_ref, wwhh_ref,              # VMEM-resident weights
                    h_out_ref, c_out_ref,                     # outputs
                    h_st, c_st, wordc):                       # persistent VMEM scratch
    s = pl.program_id(0)
    H = h_st.shape[1]
    max_in = slots_ref.shape[1]
    total = wordc.shape[0]                 # seq_len * max_out word-cell slots
    max_out = wwi_ref.shape[1] // 3

    @pl.when(s == 0)
    def _init():
        h_st[...] = init_ref[0:1, :]
        c_st[...] = init_ref[1:2, :]
        wordc[...] = jnp.zeros_like(wordc)

    h0 = h_st[...]                         # (1, H)
    c0 = c_st[...]                         # (1, H)

    # ---- MultiInputLSTMCell gates (input-side matmul precomputed; only h-side here) ----
    wi = wi_ref[0]                         # (3, H): rows = i, o, g  (x@W_ih + b)
    i_g = jax.nn.sigmoid(wi[0:1] + jnp.dot(h0, whh_ref[0], preferred_element_type=jnp.float32))
    o_g = jax.nn.sigmoid(wi[1:2] + jnp.dot(h0, whh_ref[1], preferred_element_type=jnp.float32))
    g_g = jnp.tanh(wi[2:3] + jnp.dot(h0, whh_ref[2], preferred_element_type=jnp.float32))

    # ---- gather incoming word-cell states with a one-hot matmul (no dynamic indexing) ----
    row_i = jax.lax.broadcasted_iota(jnp.int32, (max_in, total), 0)
    col_i = jax.lax.broadcasted_iota(jnp.int32, (max_in, total), 1)
    onehot = jnp.zeros((max_in, total), jnp.float32)
    for k in range(max_in):                                    # max_in is small & static
        slot_k = slots_ref[s, k]                               # -1 means "no incoming word"
        onehot = onehot + ((row_i == k) & (col_i == slot_k)).astype(jnp.float32)
    cin = jnp.dot(onehot, wordc[...], preferred_element_type=jnp.float32)   # (max_in, H)
    vmask = jnp.sum(onehot, axis=1, keepdims=True)                          # (max_in, 1)

    # ---- alpha attention + softmax merge over [i; alpha] ----
    awi = awi_ref[0]                                                        # (1, H)
    alpha = jax.nn.sigmoid(awi + jnp.dot(cin, awhh_ref[...],
                                         preferred_element_type=jnp.float32))
    # safe without max-subtraction: i/alpha are sigmoid outputs in (0,1) -> exp in (1, e)
    exp_i = jnp.exp(i_g)                                                    # (1, H)
    exp_a = jnp.exp(alpha) * vmask                                          # (max_in, H)
    denom = exp_i + jnp.sum(exp_a, axis=0, keepdims=True)
    inv_denom = pl.reciprocal(denom, approx=True)
    c_merge = (g_g * exp_i + jnp.sum(cin * exp_a, axis=0, keepdims=True)) * inv_denom
    c_plain = (1.0 - i_g) * c0 + i_g * g_g                                  # coupled forget

    use_words = (nin_ref[s] > 0).astype(jnp.float32)
    c1 = use_words * c_merge + (1.0 - use_words) * c_plain
    h1 = o_g * jnp.tanh(c1)

    h_st[...] = h1
    c_st[...] = c1
    h_out_ref[0] = h1
    c_out_ref[0] = c1

    # ---- WordLSTMCell for the (padded) words matched at this step ----
    wwi = wwi_ref[0]                       # (3*max_out, H): rows = f-block, i-block, g-block
    f_w = jax.nn.sigmoid(wwi[0:max_out] +
                         jnp.dot(h1, wwhh_ref[0], preferred_element_type=jnp.float32))
    i_w = jax.nn.sigmoid(wwi[max_out:2 * max_out] +
                         jnp.dot(h1, wwhh_ref[1], preferred_element_type=jnp.float32))
    g_w = jnp.tanh(wwi[2 * max_out:3 * max_out] +
                   jnp.dot(h1, wwhh_ref[2], preferred_element_type=jnp.float32))
    ct = f_w * c1 + i_w * g_w              # (max_out, H)

    # scatter into fixed slots [s*max_out, (s+1)*max_out) via one-hot accumulate
    row_s = jax.lax.broadcasted_iota(jnp.int32, (total, max_out), 0)
    col_s = jax.lax.broadcasted_iota(jnp.int32, (total, max_out), 1)
    scat = (row_s == s * max_out + col_s).astype(jnp.float32)
    wordc[...] = wordc[...] + jnp.dot(scat, ct, preferred_element_type=jnp.float32)


# ----------------------------------------------------------------------------------
# Jitted wrapper: batched pre-projections + the single pallas_call
# ----------------------------------------------------------------------------------

@jax.jit
def _lattice_run(x_chars, nin, slots, word_ids, order, inv_order, h0, c0,
                 rnn_w_ih, rnn_w_hh, rnn_b, rnn_aw_ih, rnn_aw_hh, rnn_ab,
                 word_w_ih, word_w_hh, word_b, gaz_emb):
    seq_len = x_chars.shape[0]
    H = rnn_aw_hh.shape[0]
    max_out = word_ids.shape[1]
    total = seq_len * max_out
    hiprec = jax.lax.Precision.HIGHEST

    # --- hoisted input-side matmuls (full-sequence, fills MXU sublanes) ---
    xs = jnp.take(x_chars, order, axis=0)                                   # processing order
    wi = (jnp.dot(xs, rnn_w_ih, precision=hiprec) + rnn_b.reshape(1, -1)
          ).reshape(seq_len, 3, H)
    awi = (jnp.dot(xs, rnn_aw_ih, precision=hiprec) + rnn_ab.reshape(1, -1)
           ).reshape(seq_len, 1, H)
    wemb = jnp.take(gaz_emb, word_ids.reshape(-1), axis=0)                  # (S*max_out, Dw)
    # TODO(synk): gaz_word_embedding dropout is treated as eval-mode identity.
    wwi = jnp.dot(wemb, word_w_ih, precision=hiprec) + word_b.reshape(1, -1)
    wwi = (wwi.reshape(seq_len, max_out, 3, H)
              .transpose(0, 2, 1, 3)
              .reshape(seq_len, 3 * max_out, H))

    # --- gate-major weight layout so per-gate slices never cross lanes ---
    whh = rnn_w_hh.reshape(H, 3, H).transpose(1, 0, 2)                      # (3, H, H)
    wwhh = word_w_hh.reshape(H, 3, H).transpose(1, 0, 2)                    # (3, H, H)
    init = jnp.concatenate([h0, c0], axis=0)                                # (2, H)

    grid_spec = pltpu.PrefetchScalarGridSpec(
        num_scalar_prefetch=2,
        grid=(seq_len,),
        in_specs=[
            pl.BlockSpec((2, H), lambda s, *_: (0, 0)),                     # init h/c
            pl.BlockSpec((1, 3, H), lambda s, *_: (s, 0, 0)),               # x@W_ih + b
            pl.BlockSpec((1, 1, H), lambda s, *_: (s, 0, 0)),               # x@aW_ih + ab
            pl.BlockSpec((1, 3 * max_out, H), lambda s, *_: (s, 0, 0)),     # word x@W_ih + b
            pl.BlockSpec((3, H, H), lambda s, *_: (0, 0, 0)),               # W_hh (resident)
            pl.BlockSpec((H, H), lambda s, *_: (0, 0)),                     # aW_hh (resident)
            pl.BlockSpec((3, H, H), lambda s, *_: (0, 0, 0)),               # word W_hh
        ],
        out_specs=(
            pl.BlockSpec((1, 1, H), lambda s, *_: (s, 0, 0)),
            pl.BlockSpec((1, 1, H), lambda s, *_: (s, 0, 0)),
        ),
        scratch_shapes=[
            pltpu.VMEM((1, H), jnp.float32),        # h state
            pltpu.VMEM((1, H), jnp.float32),        # c state
            pltpu.VMEM((total, H), jnp.float32),    # word-cell states for all slots
        ],
    )

    h_seq, c_seq = pl.pallas_call(
        _lattice_kernel,
        grid_spec=grid_spec,
        out_shape=(jax.ShapeDtypeStruct((seq_len, 1, H), jnp.float32),
                   jax.ShapeDtypeStruct((seq_len, 1, H), jnp.float32)),
        compiler_params=pltpu.CompilerParams(dimension_semantics=("arbitrary",)),
    )(nin, slots, init, wi, awi, wwi, whh, rnn_aw_hh, wwhh)

    h_seq = jnp.take(h_seq.reshape(seq_len, H), inv_order, axis=0)[None]    # (1, S, H)
    c_seq = jnp.take(c_seq.reshape(seq_len, H), inv_order, axis=0)[None]
    return h_seq, c_seq


# ----------------------------------------------------------------------------------
# Host-side static lattice bookkeeping (mirrors the PyTorch module)
# ----------------------------------------------------------------------------------

def init_list_of_objects(size):
    return [list() for _ in range(size)]


def convert_forward_gaz_to_backward(forward_gaz):
    length = len(forward_gaz)
    backward_gaz = init_list_of_objects(length)
    for idx in range(length):
        if forward_gaz[idx]:
            assert len(forward_gaz[idx]) == 2
            num = len(forward_gaz[idx][0])
            for idy in range(num):
                the_id = forward_gaz[idx][0][idy]
                the_length = forward_gaz[idx][1][idy]
                new_pos = idx + the_length - 1
                if backward_gaz[new_pos]:
                    backward_gaz[new_pos][0].append(the_id)
                    backward_gaz[new_pos][1].append(the_length)
                else:
                    backward_gaz[new_pos] = [[the_id], [the_length]]
    return backward_gaz


def _build_lattice_tables(skip, seq_len, left2right):
    """Static int32 tables encoding the lattice wiring in processing order."""
    if not left2right:
        skip = convert_forward_gaz_to_backward(skip)
    order = list(range(seq_len)) if left2right else list(reversed(range(seq_len)))
    pos_to_step = {t: s for s, t in enumerate(order)}

    max_out = max([len(skip[t][0]) if skip[t] else 0 for t in range(seq_len)] + [1])
    word_ids = np.zeros((seq_len, max_out), np.int32)          # padded with id 0 (never read)
    incoming = [[] for _ in range(seq_len)]                    # per processing step
    for s, t in enumerate(order):
        if skip[t]:
            for k, (wid, length) in enumerate(zip(skip[t][0], skip[t][1])):
                word_ids[s, k] = wid
                dest_pos = t + length - 1 if left2right else t - length + 1
                if 0 <= dest_pos < seq_len:
                    dest_step = pos_to_step[dest_pos]
                    if dest_step > s:          # only future steps can consume it (as in torch)
                        incoming[dest_step].append(s * max_out + k)
    max_in = max([len(v) for v in incoming] + [1])
    nin = np.array([len(v) for v in incoming], np.int32)
    slots = np.full((seq_len, max_in), -1, np.int32)
    for s, v in enumerate(incoming):
        slots[s, :len(v)] = v
    order_arr = np.array(order, np.int32)
    inv_order = np.argsort(order_arr).astype(np.int32)
    return nin, slots, word_ids, order_arr, inv_order


def lattice_lstm_forward(params, input_bse, skip_input, left2right, hidden=None):
    """input_bse: (1, seq_len, E).  Returns (hidden, memory), each (1, seq_len, H)."""
    input_bse = jnp.asarray(input_bse, jnp.float32)
    assert input_bse.shape[0] == 1
    seq_len = input_bse.shape[1]
    H = params["rnn_aw_hh"].shape[0]

    nin, slots, word_ids, order, inv_order = _build_lattice_tables(
        skip_input[0], seq_len, left2right)

    if hidden is not None:
        h0, c0 = hidden
    else:
        h0 = jnp.zeros((1, H), jnp.float32)
        c0 = jnp.zeros((1, H), jnp.float32)

    return _lattice_run(
        input_bse[0],
        jnp.asarray(nin), jnp.asarray(slots), jnp.asarray(word_ids),
        jnp.asarray(order), jnp.asarray(inv_order),
        h0, c0,
        params["rnn_w_ih"], params["rnn_w_hh"], params["rnn_b"],
        params["rnn_aw_ih"], params["rnn_aw_hh"], params["rnn_ab"],
        params["word_w_ih"], params["word_w_hh"], params["word_b"],
        params["gaz_emb"])


# ----------------------------------------------------------------------------------
# Plain NumPy reference (mirrors the PyTorch forward step-by-step) for verification
# ----------------------------------------------------------------------------------

def _np_sigmoid(z):
    return 1.0 / (1.0 + np.exp(-z))


def _reference_forward(params, input_bse, skip_input, left2right):
    W = {k: np.asarray(v, np.float32) for k, v in params.items()}
    x = np.asarray(input_bse, np.float32)[0]
    seq_len = x.shape[0]
    H = W["rnn_aw_hh"].shape[0]
    skip = skip_input[0]
    if not left2right:
        skip = convert_forward_gaz_to_backward(skip)
    order = list(range(seq_len)) if left2right else list(reversed(range(seq_len)))
    hx = np.zeros((1, H), np.float32)
    cx = np.zeros((1, H), np.float32)
    input_c = [[] for _ in range(seq_len)]
    hid = [None] * seq_len
    mem = [None] * seq_len
    for t in order:
        gates = hx @ W["rnn_w_hh"] + W["rnn_b"] + x[t:t + 1] @ W["rnn_w_ih"]
        i = _np_sigmoid(gates[:, :H]); o = _np_sigmoid(gates[:, H:2 * H]); g = np.tanh(gates[:, 2 * H:])
        if len(input_c[t]) == 0:
            c1 = (1.0 - i) * cx + i * g
        else:
            cin = np.concatenate(input_c[t], axis=0)
            a_wi = x[t:t + 1] @ W["rnn_aw_ih"] + W["rnn_ab"]
            alpha = _np_sigmoid(a_wi + cin @ W["rnn_aw_hh"])
            allv = np.exp(np.concatenate([i, alpha], axis=0))
            allv = allv / allv.sum(0, keepdims=True)
            merge = np.concatenate([g, cin], axis=0)
            c1 = (merge * allv).sum(0, keepdims=True)
        h1 = o * np.tanh(c1)
        hx, cx = h1, c1
        hid[t], mem[t] = h1, c1
        if skip[t]:
            ids, lens = skip[t][0], skip[t][1]
            wemb = W["gaz_emb"][np.asarray(ids, np.int64)]
            wg = hx @ W["word_w_hh"] + W["word_b"] + wemb @ W["word_w_ih"]
            f = _np_sigmoid(wg[:, :H]); iw = _np_sigmoid(wg[:, H:2 * H]); gw = np.tanh(wg[:, 2 * H:])
            ct = f * cx + iw * gw
            for idx, length in enumerate(lens):
                dest = t + length - 1 if left2right else t - length + 1
                if 0 <= dest < seq_len:
                    input_c[dest].append(ct[idx:idx + 1])
    h = np.stack([r[0] for r in hid], axis=0)[None]
    c = np.stack([r[0] for r in mem], axis=0)[None]
    return h, c


# ----------------------------------------------------------------------------------
# Deterministic parameter construction (mirrors reset_parameters of the module)
# ----------------------------------------------------------------------------------

def make_params(key, input_dim, hidden_dim, gaz_dim, gaz_vocab):
    ortho = jax.nn.initializers.orthogonal()
    k1, k2, k3, k4 = jax.random.split(key, 4)
    eye3 = jnp.tile(jnp.eye(hidden_dim, dtype=jnp.float32), (1, 3))   # eye.repeat(1, 3)
    return {
        # MultiInputLSTMCell
        "rnn_w_ih": ortho(k1, (input_dim, 3 * hidden_dim), jnp.float32),
        "rnn_w_hh": eye3,
        "rnn_b": jnp.zeros((1, 3 * hidden_dim), jnp.float32),
        "rnn_aw_ih": ortho(k2, (input_dim, hidden_dim), jnp.float32),
        "rnn_aw_hh": jnp.eye(hidden_dim, dtype=jnp.float32),
        "rnn_ab": jnp.zeros((1, hidden_dim), jnp.float32),
        # WordLSTMCell
        "word_w_ih": ortho(k3, (gaz_dim, 3 * hidden_dim), jnp.float32),
        "word_w_hh": eye3,
        "word_b": jnp.zeros((1, 3 * hidden_dim), jnp.float32),
        # gaz word embedding table
        "gaz_emb": jax.random.normal(k4, (gaz_vocab, gaz_dim), jnp.float32),
    }


# ----------------------------------------------------------------------------------

if __name__ == "__main__":
    SEQ_LEN, INPUT_DIM, HIDDEN_DIM, GAZ_DIM, GAZ_VOCAB = 8, 16, 32, 24, 50

    key = jax.random.PRNGKey(0)
    k_params, k_input = jax.random.split(key)
    params = make_params(k_params, INPUT_DIM, HIDDEN_DIM, GAZ_DIM, GAZ_VOCAB)

    char_input = jax.random.normal(k_input, (1, SEQ_LEN, INPUT_DIM), jnp.float32)

    # skip_input: 4-D list, batch of 1.  Position 1 matches words 5 (len 2) and 11 (len 3),
    # position 2 matches word 20 (len 2) (so position 3 merges TWO word cells),
    # position 4 matches word 7 (len 3).
    skip_input = [[
        [],
        [[5, 11], [2, 3]],
        [[20], [2]],
        [],
        [[7], [3]],
        [],
        [],
        [],
    ]]

    h_fwd, c_fwd = lattice_lstm_forward(params, char_input, skip_input, left2right=True)
    h_bwd, c_bwd = lattice_lstm_forward(params, char_input, skip_input, left2right=False)
    jax.block_until_ready((h_fwd, c_fwd, h_bwd, c_bwd))

    assert h_fwd.shape == (1, SEQ_LEN, HIDDEN_DIM)
    assert c_fwd.shape == (1, SEQ_LEN, HIDDEN_DIM)
    assert h_bwd.shape == (1, SEQ_LEN, HIDDEN_DIM)
    assert c_bwd.shape == (1, SEQ_LEN, HIDDEN_DIM)

    # Verify against a plain NumPy transcription of the PyTorch forward pass.
    for got_h, got_c, l2r in [(h_fwd, c_fwd, True), (h_bwd, c_bwd, False)]:
        ref_h, ref_c = _reference_forward(params, np.asarray(char_input), skip_input, l2r)
        np.testing.assert_allclose(np.asarray(got_h), ref_h, rtol=2e-2, atol=2e-2)
        np.testing.assert_allclose(np.asarray(got_c), ref_c, rtol=2e-2, atol=2e-2)

    print("KERNEL_OK")
</pallas_src>

<mosaic_0001>
module attributes {stable_mosaic.version = 11 : i64} {
  func.func @_lattice_kernel(%arg0: i32, %arg1: memref<8xi32, #tpu.memory_space<smem>>, %arg2: memref<8x2xi32, #tpu.memory_space<smem>>, %arg3: memref<2x32xf32, #tpu.memory_space<vmem>>, %arg4: memref<1x3x32xf32, #tpu.memory_space<vmem>>, %arg5: memref<1x1x32xf32, #tpu.memory_space<vmem>>, %arg6: memref<1x6x32xf32, #tpu.memory_space<vmem>>, %arg7: memref<3x32x32xf32, #tpu.memory_space<vmem>>, %arg8: memref<32x32xf32, #tpu.memory_space<vmem>>, %arg9: memref<3x32x32xf32, #tpu.memory_space<vmem>>, %arg10: memref<1x1x32xf32, #tpu.memory_space<vmem>>, %arg11: memref<1x1x32xf32, #tpu.memory_space<vmem>>, %arg12: memref<1x32xf32, #tpu.memory_space<vmem>>, %arg13: memref<1x32xf32, #tpu.memory_space<vmem>>, %arg14: memref<16x32xf32, #tpu.memory_space<vmem>>) attributes {dimension_semantics = [#tpu.dimension_semantics<arbitrary>], iteration_bounds = array<i64: 8>, scalar_prefetch = 2 : i64, scratch_operands = 3 : i64, tpu.core_type = #tpu.core_type<tc>, window_params = [{pipeline_mode = #tpu.pipeline_mode<synchronous>, transform_indices = @transform_0, window_bounds = array<i64: 2, 32>}, {transform_indices = @transform_1, window_bounds = array<i64: 1, 3, 32>}, {transform_indices = @transform_2, window_bounds = array<i64: 1, 1, 32>}, {transform_indices = @transform_3, window_bounds = array<i64: 1, 6, 32>}, {pipeline_mode = #tpu.pipeline_mode<synchronous>, transform_indices = @transform_4, window_bounds = array<i64: 3, 32, 32>}, {pipeline_mode = #tpu.pipeline_mode<synchronous>, transform_indices = @transform_5, window_bounds = array<i64: 32, 32>}, {pipeline_mode = #tpu.pipeline_mode<synchronous>, transform_indices = @transform_6, window_bounds = array<i64: 3, 32, 32>}, {transform_indices = @transform_7, window_bounds = array<i64: 1, 1, 32>}, {transform_indices = @transform_8, window_bounds = array<i64: 1, 1, 32>}]} {
    %c0_i32 = arith.constant 0 : i32
    %0 = arith.cmpi eq, %arg0, %c0_i32 : i32
    %1 = arith.extui %0 : i1 to i32
    %c0_i32_0 = arith.constant 0 : i32
    %2 = arith.cmpi ne, %1, %c0_i32_0 : i32
    scf.if %2 {
      %c0_70 = arith.constant 0 : index
      %c0_71 = arith.constant 0 : index
      %158 = vector.load %arg3[%c0_70, %c0_71] : memref<2x32xf32, #tpu.memory_space<vmem>>, vector<1x32xf32>
      %c0_72 = arith.constant 0 : index
      %c0_73 = arith.constant 0 : index
      %159 = vector.load %arg12[%c0_72, %c0_73] : memref<1x32xf32, #tpu.memory_space<vmem>>, vector<1x32xf32>
      tpu.vector_store %arg12[%c0_72, %c0_73], %158 {strides = array<i32>} : memref<1x32xf32, #tpu.memory_space<vmem>>, vector<1x32xf32>,
      %c1_74 = arith.constant 1 : index
      %c0_75 = arith.constant 0 : index
      %160 = vector.load %arg3[%c1_74, %c0_75] : memref<2x32xf32, #tpu.memory_space<vmem>>, vector<1x32xf32>
      %c0_76 = arith.constant 0 : index
      %c0_77 = arith.constant 0 : index
      %161 = vector.load %arg13[%c0_76, %c0_77] : memref<1x32xf32, #tpu.memory_space<vmem>>, vector<1x32xf32>
      tpu.vector_store %arg13[%c0_76, %c0_77], %160 {strides = array<i32>} : memref<1x32xf32, #tpu.memory_space<vmem>>, vector<1x32xf32>,
      %cst_78 = arith.constant 0.000000e+00 : f32
      %162 = vector.broadcast %cst_78 : f32 to vector<16x32xf32>
      %c0_79 = arith.constant 0 : index
      %c0_80 = arith.constant 0 : index
      %163 = vector.load %arg14[%c0_79, %c0_80] : memref<16x32xf32, #tpu.memory_space<vmem>>, vector<16x32xf32>
      tpu.vector_store %arg14[%c0_79, %c0_80], %162 {strides = array<i32>} : memref<16x32xf32, #tpu.memory_space<vmem>>, vector<16x32xf32>,
    } else {
    }
    %c0 = arith.constant 0 : index
    %c0_1 = arith.constant 0 : index
    %3 = vector.load %arg12[%c0, %c0_1] : memref<1x32xf32, #tpu.memory_space<vmem>>, vector<1x32xf32>
    %c0_2 = arith.constant 0 : index
    %c0_3 = arith.constant 0 : index
    %4 = vector.load %arg13[%c0_2, %c0_3] : memref<1x32xf32, #tpu.memory_space<vmem>>, vector<1x32xf32>
    %c0_4 = arith.constant 0 : index
    %c0_5 = arith.constant 0 : index
    %c0_6 = arith.constant 0 : index
    %5 = vector.load %arg4[%c0_4, %c0_5, %c0_6] : memref<1x3x32xf32, #tpu.memory_space<vmem>>, vector<1x3x32xf32>
    %6 = vector.shape_cast %5 : vector<1x3x32xf32> to vector<3x32xf32>
    %7 = vector.extract_strided_slice %6 {offsets = [0, 0], sizes = [1, 32], strides = [1, 1]} : vector<3x32xf32> to vector<1x32xf32>
    %c0_7 = arith.constant 0 : index
    %c0_8 = arith.constant 0 : index
    %c0_9 = arith.constant 0 : index
    %8 = vector.load %arg7[%c0_7, %c0_8, %c0_9] : memref<3x32x32xf32, #tpu.memory_space<vmem>>, vector<1x32x32xf32>
    %9 = vector.shape_cast %8 : vector<1x32x32xf32> to vector<32x32xf32>
    %cst = arith.constant dense<0.000000e+00> : vector<1x32xf32>
    %10 = tpu.matmul %3, %9, %cst {dimension_numbers = #tpu.dot_dimension_numbers<[1], [0], [0], [1], [0, 0, 1, 1], [], []>} : vector<1x32xf32>, vector<32x32xf32>, vector<1x32xf32> -> vector<1x32xf32>
    %11 = arith.addf %7, %10 : vector<1x32xf32>
    %12 = arith.negf %11 : vector<1x32xf32>
    %13 = math.exp %12 : vector<1x32xf32>
    %cst_10 = arith.constant 1.000000e+00 : f32
    %14 = vector.broadcast %cst_10 : f32 to vector<1x32xf32>
    %15 = arith.addf %14, %13 : vector<1x32xf32>
    %16 = arith.divf %14, %15 : vector<1x32xf32>
    %17 = vector.extract_strided_slice %6 {offsets = [1, 0], sizes = [1, 32], strides = [1, 1]} : vector<3x32xf32> to vector<1x32xf32>
    %c1 = arith.constant 1 : index
    %c0_11 = arith.constant 0 : index
    %c0_12 = arith.constant 0 : index
    %18 = vector.load %arg7[%c1, %c0_11, %c0_12] : memref<3x32x32xf32, #tpu.memory_space<vmem>>, vector<1x32x32xf32>
    %19 = vector.shape_cast %18 : vector<1x32x32xf32> to vector<32x32xf32>
    %cst_13 = arith.constant dense<0.000000e+00> : vector<1x32xf32>
    %20 = tpu.matmul %3, %19, %cst_13 {dimension_numbers = #tpu.dot_dimension_numbers<[1], [0], [0], [1], [0, 0, 1, 1], [], []>} : vector<1x32xf32>, vector<32x32xf32>, vector<1x32xf32> -> vector<1x32xf32>
    %21 = arith.addf %17, %20 : vector<1x32xf32>
    %22 = arith.negf %21 : vector<1x32xf32>
    %23 = math.exp %22 : vector<1x32xf32>
    %cst_14 = arith.constant 1.000000e+00 : f32
    %24 = vector.broadcast %cst_14 : f32 to vector<1x32xf32>
    %25 = arith.addf %24, %23 : vector<1x32xf32>
    %26 = arith.divf %24, %25 : vector<1x32xf32>
    %27 = vector.extract_strided_slice %6 {offsets = [2, 0], sizes = [1, 32], strides = [1, 1]} : vector<3x32xf32> to vector<1x32xf32>
    %c2 = arith.constant 2 : index
    %c0_15 = arith.constant 0 : index
    %c0_16 = arith.constant 0 : index
    %28 = vector.load %arg7[%c2, %c0_15, %c0_16] : memref<3x32x32xf32, #tpu.memory_space<vmem>>, vector<1x32x32xf32>
    %29 = vector.shape_cast %28 : vector<1x32x32xf32> to vector<32x32xf32>
    %cst_17 = arith.constant dense<0.000000e+00> : vector<1x32xf32>
    %30 = tpu.matmul %3, %29, %cst_17 {dimension_numbers = #tpu.dot_dimension_numbers<[1], [0], [0], [1], [0, 0, 1, 1], [], []>} : vector<1x32xf32>, vector<32x32xf32>, vector<1x32xf32> -> vector<1x32xf32>
    %31 = arith.addf %27, %30 : vector<1x32xf32>
    %32 = math.tanh %31 : vector<1x32xf32>
    %33 = tpu.iota {dimensions = array<i32: 0>} : vector<2x16xi32>
    %34 = tpu.iota {dimensions = array<i32: 1>} : vector<2x16xi32>
    %cst_18 = arith.constant 0.000000e+00 : f32
    %35 = vector.broadcast %cst_18 : f32 to vector<2x16xf32>
    %36 = arith.index_cast %arg0 : i32 to index
    %c0_19 = arith.constant 0 : index
    %37 = memref.load %arg2[%36, %c0_19] : memref<8x2xi32, #tpu.memory_space<smem>>
    %c0_i32_20 = arith.constant 0 : i32
    %38 = vector.broadcast %c0_i32_20 : i32 to vector<2x16xi32>
    %39 = arith.cmpi eq, %33, %38 : vector<2x16xi32>
    %40 = vector.broadcast %37 : i32 to vector<2x16xi32>
    %41 = arith.cmpi eq, %34, %40 : vector<2x16xi32>
    %42 = arith.andi %39, %41 : vector<2x16xi1>
    %43 = arith.extui %42 : vector<2x16xi1> to vector<2x16xi32>
    %44 = arith.sitofp %43 : vector<2x16xi32> to vector<2x16xf32>
    %45 = arith.addf %35, %44 : vector<2x16xf32>
    %46 = arith.index_cast %arg0 : i32 to index
    %c1_21 = arith.constant 1 : index
    %47 = memref.load %arg2[%46, %c1_21] : memref<8x2xi32, #tpu.memory_space<smem>>
    %c1_i32 = arith.constant 1 : i32
    %48 = vector.broadcast %c1_i32 : i32 to vector<2x16xi32>
    %49 = arith.cmpi eq, %33, %48 : vector<2x16xi32>
    %50 = vector.broadcast %47 : i32 to vector<2x16xi32>
    %51 = arith.cmpi eq, %34, %50 : vector<2x16xi32>
    %52 = arith.andi %49, %51 : vector<2x16xi1>
    %53 = arith.extui %52 : vector<2x16xi1> to vector<2x16xi32>
    %54 = arith.sitofp %53 : vector<2x16xi32> to vector<2x16xf32>
    %55 = arith.addf %45, %54 : vector<2x16xf32>
    %c0_22 = arith.constant 0 : index
    %c0_23 = arith.constant 0 : index
    %56 = vector.load %arg14[%c0_22, %c0_23] : memref<16x32xf32, #tpu.memory_space<vmem>>, vector<16x32xf32>
    %cst_24 = arith.constant dense<0.000000e+00> : vector<2x32xf32>
    %57 = tpu.matmul %55, %56, %cst_24 {dimension_numbers = #tpu.dot_dimension_numbers<[1], [0], [0], [1], [0, 0, 1, 1], [], []>} : vector<2x16xf32>, vector<16x32xf32>, vector<2x32xf32> -> vector<2x32xf32>
    %cst_25 = arith.constant dense<0.000000e+00> : vector<2xf32>
    %58 = vector.multi_reduction <add>, %55, %cst_25 [1] : vector<2x16xf32> to vector<2xf32>
    %59 = vector.shape_cast %58 : vector<2xf32> to vector<2x1xf32>
    %c0_26 = arith.constant 0 : index
    %c0_27 = arith.constant 0 : index
    %c0_28 = arith.constant 0 : index
    %60 = vector.load %arg5[%c0_26, %c0_27, %c0_28] : memref<1x1x32xf32, #tpu.memory_space<vmem>>, vector<1x1x32xf32>
    %61 = vector.shape_cast %60 : vector<1x1x32xf32> to vector<1x32xf32>
    %c0_29 = arith.constant 0 : index
    %c0_30 = arith.constant 0 : index
    %62 = vector.load %arg8[%c0_29, %c0_30] : memref<32x32xf32, #tpu.memory_space<vmem>>, vector<32x32xf32>
    %cst_31 = arith.constant dense<0.000000e+00> : vector<2x32xf32>
    %63 = tpu.matmul %57, %62, %cst_31 {dimension_numbers = #tpu.dot_dimension_numbers<[1], [0], [0], [1], [0, 0, 1, 1], [], []>} : vector<2x32xf32>, vector<32x32xf32>, vector<2x32xf32> -> vector<2x32xf32>
    %64 = vector.broadcast %61 : vector<1x32xf32> to vector<2x32xf32>
    %65 = arith.addf %64, %63 : vector<2x32xf32>
    %66 = arith.negf %65 : vector<2x32xf32>
    %67 = math.exp %66 : vector<2x32xf32>
    %cst_32 = arith.constant 1.000000e+00 : f32
    %68 = vector.broadcast %cst_32 : f32 to vector<2x32xf32>
    %69 = arith.addf %68, %67 : vector<2x32xf32>
    %70 = arith.divf %68, %69 : vector<2x32xf32>
    %71 = math.exp %16 : vector<1x32xf32>
    %72 = math.exp %70 : vector<2x32xf32>
    %73 = vector.broadcast %59 : vector<2x1xf32> to vector<2x32xf32>
    %74 = arith.mulf %72, %73 : vector<2x32xf32>
    %cst_33 = arith.constant dense<0.000000e+00> : vector<32xf32>
    %75 = vector.multi_reduction <add>, %74, %cst_33 [0] : vector<2x32xf32> to vector<32xf32>
    %76 = vector.shape_cast %75 : vector<32xf32> to vector<1x32xf32>
    %77 = arith.addf %71, %76 : vector<1x32xf32>
    %78 = tpu.reciprocal %77 {approx = true} : vector<1x32xf32> -> vector<1x32xf32>
    %79 = arith.mulf %32, %71 : vector<1x32xf32>
    %80 = arith.mulf %57, %74 : vector<2x32xf32>
    %cst_34 = arith.constant dense<0.000000e+00> : vector<32xf32>
    %81 = vector.multi_reduction <add>, %80, %cst_34 [0] : vector<2x32xf32> to vector<32xf32>
    %82 = vector.shape_cast %81 : vector<32xf32> to vector<1x32xf32>
    %83 = arith.addf %79, %82 : vector<1x32xf32>
    %84 = arith.mulf %83, %78 : vector<1x32xf32>
    %cst_35 = arith.constant 1.000000e+00 : f32
    %85 = vector.broadcast %cst_35 : f32 to vector<1x32xf32>
    %86 = arith.subf %85, %16 : vector<1x32xf32>
    %87 = arith.mulf %86, %4 : vector<1x32xf32>
    %88 = arith.mulf %16, %32 : vector<1x32xf32>
    %89 = arith.addf %87, %88 : vector<1x32xf32>
    %90 = arith.index_cast %arg0 : i32 to index
    %91 = memref.load %arg1[%90] : memref<8xi32, #tpu.memory_space<smem>>
    %c0_i32_36 = arith.constant 0 : i32
    %92 = arith.cmpi sgt, %91, %c0_i32_36 : i32
    %93 = arith.extui %92 : i1 to i32
    %94 = arith.sitofp %93 : i32 to f32
    %95 = vector.broadcast %94 : f32 to vector<1x32xf32>
    %96 = arith.mulf %95, %84 : vector<1x32xf32>
    %cst_37 = arith.constant 1.000000e+00 : f32
    %97 = arith.subf %cst_37, %94 : f32
    %98 = vector.broadcast %97 : f32 to vector<1x32xf32>
    %99 = arith.mulf %98, %89 : vector<1x32xf32>
    %100 = arith.addf %96, %99 : vector<1x32xf32>
    %101 = math.tanh %100 : vector<1x32xf32>
    %102 = arith.mulf %26, %101 : vector<1x32xf32>
    %c0_38 = arith.constant 0 : index
    %c0_39 = arith.constant 0 : index
    %103 = vector.load %arg12[%c0_38, %c0_39] : memref<1x32xf32, #tpu.memory_space<vmem>>, vector<1x32xf32>
    tpu.vector_store %arg12[%c0_38, %c0_39], %102 {strides = array<i32>} : memref<1x32xf32, #tpu.memory_space<vmem>>, vector<1x32xf32>,
    %c0_40 = arith.constant 0 : index
    %c0_41 = arith.constant 0 : index
    %104 = vector.load %arg13[%c0_40, %c0_41] : memref<1x32xf32, #tpu.memory_space<vmem>>, vector<1x32xf32>
    tpu.vector_store %arg13[%c0_40, %c0_41], %100 {strides = array<i32>} : memref<1x32xf32, #tpu.memory_space<vmem>>, vector<1x32xf32>,
    %c0_42 = arith.constant 0 : index
    %c0_43 = arith.constant 0 : index
    %c0_44 = arith.constant 0 : index
    %105 = vector.load %arg10[%c0_42, %c0_43, %c0_44] : memref<1x1x32xf32, #tpu.memory_space<vmem>>, vector<1x1x32xf32>
    %106 = vector.shape_cast %105 : vector<1x1x32xf32> to vector<1x32xf32>
    %107 = vector.shape_cast %102 : vector<1x32xf32> to vector<1x1x32xf32>
    tpu.vector_store %arg10[%c0_42, %c0_43, %c0_44], %107 {strides = array<i32>} : memref<1x1x32xf32, #tpu.memory_space<vmem>>, vector<1x1x32xf32>,
    %c0_45 = arith.constant 0 : index
    %c0_46 = arith.constant 0 : index
    %c0_47 = arith.constant 0 : index
    %108 = vector.load %arg11[%c0_45, %c0_46, %c0_47] : memref<1x1x32xf32, #tpu.memory_space<vmem>>, vector<1x1x32xf32>
    %109 = vector.shape_cast %108 : vector<1x1x32xf32> to vector<1x32xf32>
    %110 = vector.shape_cast %100 : vector<1x32xf32> to vector<1x1x32xf32>
    tpu.vector_store %arg11[%c0_45, %c0_46, %c0_47], %110 {strides = array<i32>} : memref<1x1x32xf32, #tpu.memory_space<vmem>>, vector<1x1x32xf32>,
    %c0_48 = arith.constant 0 : index
    %c0_49 = arith.constant 0 : index
    %c0_50 = arith.constant 0 : index
    %111 = vector.load %arg6[%c0_48, %c0_49, %c0_50] : memref<1x6x32xf32, #tpu.memory_space<vmem>>, vector<1x6x32xf32>
    %112 = vector.shape_cast %111 : vector<1x6x32xf32> to vector<6x32xf32>
    %113 = vector.extract_strided_slice %112 {offsets = [0, 0], sizes = [2, 32], strides = [1, 1]} : vector<6x32xf32> to vector<2x32xf32>
    %c0_51 = arith.constant 0 : index
    %c0_52 = arith.constant 0 : index
    %c0_53 = arith.constant 0 : index
    %114 = vector.load %arg9[%c0_51, %c0_52, %c0_53] : memref<3x32x32xf32, #tpu.memory_space<vmem>>, vector<1x32x32xf32>
    %115 = vector.shape_cast %114 : vector<1x32x32xf32> to vector<32x32xf32>
    %cst_54 = arith.constant dense<0.000000e+00> : vector<1x32xf32>
    %116 = tpu.matmul %102, %115, %cst_54 {dimension_numbers = #tpu.dot_dimension_numbers<[1], [0], [0], [1], [0, 0, 1, 1], [], []>} : vector<1x32xf32>, vector<32x32xf32>, vector<1x32xf32> -> vector<1x32xf32>
    %117 = vector.broadcast %116 : vector<1x32xf32> to vector<2x32xf32>
    %118 = arith.addf %113, %117 : vector<2x32xf32>
    %119 = arith.negf %118 : vector<2x32xf32>
    %120 = math.exp %119 : vector<2x32xf32>
    %cst_55 = arith.constant 1.000000e+00 : f32
    %121 = vector.broadcast %cst_55 : f32 to vector<2x32xf32>
    %122 = arith.addf %121, %120 : vector<2x32xf32>
    %123 = arith.divf %121, %122 : vector<2x32xf32>
    %124 = vector.extract_strided_slice %112 {offsets = [2, 0], sizes = [2, 32], strides = [1, 1]} : vector<6x32xf32> to vector<2x32xf32>
    %c1_56 = arith.constant 1 : index
    %c0_57 = arith.constant 0 : index
    %c0_58 = arith.constant 0 : index
    %125 = vector.load %arg9[%c1_56, %c0_57, %c0_58] : memref<3x32x32xf32, #tpu.memory_space<vmem>>, vector<1x32x32xf32>
    %126 = vector.shape_cast %125 : vector<1x32x32xf32> to vector<32x32xf32>
    %cst_59 = arith.constant dense<0.000000e+00> : vector<1x32xf32>
    %127 = tpu.matmul %102, %126, %cst_59 {dimension_numbers = #tpu.dot_dimension_numbers<[1], [0], [0], [1], [0, 0, 1, 1], [], []>} : vector<1x32xf32>, vector<32x32xf32>, vector<1x32xf32> -> vector<1x32xf32>
    %128 = vector.broadcast %127 : vector<1x32xf32> to vector<2x32xf32>
    %129 = arith.addf %124, %128 : vector<2x32xf32>
    %130 = arith.negf %129 : vector<2x32xf32>
    %131 = math.exp %130 : vector<2x32xf32>
    %cst_60 = arith.constant 1.000000e+00 : f32
    %132 = vector.broadcast %cst_60 : f32 to vector<2x32xf32>
    %133 = arith.addf %132, %131 : vector<2x32xf32>
    %134 = arith.divf %132, %133 : vector<2x32xf32>
    %135 = vector.extract_strided_slice %112 {offsets = [4, 0], sizes = [2, 32], strides = [1, 1]} : vector<6x32xf32> to vector<2x32xf32>
    %c2_61 = arith.constant 2 : index
    %c0_62 = arith.constant 0 : index
    %c0_63 = arith.constant 0 : index
    %136 = vector.load %arg9[%c2_61, %c0_62, %c0_63] : memref<3x32x32xf32, #tpu.memory_space<vmem>>, vector<1x32x32xf32>
    %137 = vector.shape_cast %136 : vector<1x32x32xf32> to vector<32x32xf32>
    %cst_64 = arith.constant dense<0.000000e+00> : vector<1x32xf32>
    %138 = tpu.matmul %102, %137, %cst_64 {dimension_numbers = #tpu.dot_dimension_numbers<[1], [0], [0], [1], [0, 0, 1, 1], [], []>} : vector<1x32xf32>, vector<32x32xf32>, vector<1x32xf32> -> vector<1x32xf32>
    %139 = vector.broadcast %138 : vector<1x32xf32> to vector<2x32xf32>
    %140 = arith.addf %135, %139 : vector<2x32xf32>
    %141 = math.tanh %140 : vector<2x32xf32>
    %142 = vector.broadcast %100 : vector<1x32xf32> to vector<2x32xf32>
    %143 = arith.mulf %123, %142 : vector<2x32xf32>
    %144 = arith.mulf %134, %141 : vector<2x32xf32>
    %145 = arith.addf %143, %144 : vector<2x32xf32>
    %146 = tpu.iota {dimensions = array<i32: 0>} : vector<16x2xi32>
    %147 = tpu.iota {dimensions = array<i32: 1>} : vector<16x2xi32>
    %c2_i32 = arith.constant 2 : i32
    %148 = arith.muli %arg0, %c2_i32 : i32
    %149 = vector.broadcast %148 : i32 to vector<16x2xi32>
    %150 = arith.addi %149, %147 : vector<16x2xi32>
    %151 = arith.cmpi eq, %146, %150 : vector<16x2xi32>
    %152 = arith.extui %151 : vector<16x2xi1> to vector<16x2xi32>
    %153 = arith.sitofp %152 : vector<16x2xi32> to vector<16x2xf32>
    %c0_65 = arith.constant 0 : index
    %c0_66 = arith.constant 0 : index
    %154 = vector.load %arg14[%c0_65, %c0_66] : memref<16x32xf32, #tpu.memory_space<vmem>>, vector<16x32xf32>
    %cst_67 = arith.constant dense<0.000000e+00> : vector<16x32xf32>
    %155 = tpu.matmul %153, %145, %cst_67 {dimension_numbers = #tpu.dot_dimension_numbers<[1], [0], [0], [1], [0, 0, 1, 1], [], []>} : vector<16x2xf32>, vector<2x32xf32>, vector<16x32xf32> -> vector<16x32xf32>
    %156 = arith.addf %154, %155 : vector<16x32xf32>
    %c0_68 = arith.constant 0 : index
    %c0_69 = arith.constant 0 : index
    %157 = vector.load %arg14[%c0_68, %c0_69] : memref<16x32xf32, #tpu.memory_space<vmem>>, vector<16x32xf32>
    tpu.vector_store %arg14[%c0_68, %c0_69], %156 {strides = array<i32>} : memref<16x32xf32, #tpu.memory_space<vmem>>, vector<16x32xf32>,
    return
  }
  func.func @transform_0(%arg0: i32, %arg1: memref<8xi32, #tpu.memory_space<smem>>, %arg2: memref<8x2xi32, #tpu.memory_space<smem>>) -> (i32, i32) {
    %c0_i32 = arith.constant 0 : i32
    %c0_i32_0 = arith.constant 0 : i32
    %c0_i32_1 = arith.constant 0 : i32
    return %c0_i32, %c0_i32_0 : i32, i32
  }
  func.func @transform_1(%arg0: i32, %arg1: memref<8xi32, #tpu.memory_space<smem>>, %arg2: memref<8x2xi32, #tpu.memory_space<smem>>) -> (i32, i32, i32) {
    %c0_i32 = arith.constant 0 : i32
    %c0_i32_0 = arith.constant 0 : i32
    %c0_i32_1 = arith.constant 0 : i32
    return %arg0, %c0_i32, %c0_i32_0 : i32, i32, i32
  }
  func.func @transform_2(%arg0: i32, %arg1: memref<8xi32, #tpu.memory_space<smem>>, %arg2: memref<8x2xi32, #tpu.memory_space<smem>>) -> (i32, i32, i32) {
    %c0_i32 = arith.constant 0 : i32
    %c0_i32_0 = arith.constant 0 : i32
    %c0_i32_1 = arith.constant 0 : i32
    return %arg0, %c0_i32, %c0_i32_0 : i32, i32, i32
  }
  func.func @transform_3(%arg0: i32, %arg1: memref<8xi32, #tpu.memory_space<smem>>, %arg2: memref<8x2xi32, #tpu.memory_space<smem>>) -> (i32, i32, i32) {
    %c0_i32 = arith.constant 0 : i32
    %c0_i32_0 = arith.constant 0 : i32
    %c0_i32_1 = arith.constant 0 : i32
    return %arg0, %c0_i32, %c0_i32_0 : i32, i32, i32
  }
  func.func @transform_4(%arg0: i32, %arg1: memref<8xi32, #tpu.memory_space<smem>>, %arg2: memref<8x2xi32, #tpu.memory_space<smem>>) -> (i32, i32, i32) {
    %c0_i32 = arith.constant 0 : i32
    %c0_i32_0 = arith.constant 0 : i32
    %c0_i32_1 = arith.constant 0 : i32
    %c0_i32_2 = arith.constant 0 : i32
    return %c0_i32, %c0_i32_0, %c0_i32_1 : i32, i32, i32
  }
  func.func @transform_5(%arg0: i32, %arg1: memref<8xi32, #tpu.memory_space<smem>>, %arg2: memref<8x2xi32, #tpu.memory_space<smem>>) -> (i32, i32) {
    %c0_i32 = arith.constant 0 : i32
    %c0_i32_0 = arith.constant 0 : i32
    %c0_i32_1 = arith.constant 0 : i32
    return %c0_i32, %c0_i32_0 : i32, i32
  }
  func.func @transform_6(%arg0: i32, %arg1: memref<8xi32, #tpu.memory_space<smem>>, %arg2: memref<8x2xi32, #tpu.memory_space<smem>>) -> (i32, i32, i32) {
    %c0_i32 = arith.constant 0 : i32
    %c0_i32_0 = arith.constant 0 : i32
    %c0_i32_1 = arith.constant 0 : i32
    %c0_i32_2 = arith.constant 0 : i32
    return %c0_i32, %c0_i32_0, %c0_i32_1 : i32, i32, i32
  }
  func.func @transform_7(%arg0: i32, %arg1: memref<8xi32, #tpu.memory_space<smem>>, %arg2: memref<8x2xi32, #tpu.memory_space<smem>>) -> (i32, i32, i32) {
    %c0_i32 = arith.constant 0 : i32
    %c0_i32_0 = arith.constant 0 : i32
    %c0_i32_1 = arith.constant 0 : i32
    return %arg0, %c0_i32, %c0_i32_0 : i32, i32, i32
  }
  func.func @transform_8(%arg0: i32, %arg1: memref<8xi32, #tpu.memory_space<smem>>, %arg2: memref<8x2xi32, #tpu.memory_space<smem>>) -> (i32, i32, i32) {
    %c0_i32 = arith.constant 0 : i32
    %c0_i32_0 = arith.constant 0 : i32
    %c0_i32_1 = arith.constant 0 : i32
    return %arg0, %c0_i32, %c0_i32_0 : i32, i32, i32
  }
}

</mosaic_0001>

<bundles_post_ra>
// kernel: _lattice_run.1
= control target key start
LH: loop header
LB: loop body
LE: loop exit
PB: predicated region body
PF: predicated region fallthrough
CT: control target
= control target key end

     0   :  { %s1924_s0 = inlined_call_operand.vmem [shape: s32[8], index: 0, kind: input, shape index: {}]   ;;  %s1925_s2 = inlined_call_operand.vmem [shape: f32[2,32], index: 2, kind: input, shape index: {}]   ;;  %s1926_s3 = inlined_call_operand.vmem [shape: f32[8,3,32], index: 3, kind: input, shape index: {}]   ;;  %s1927_s4 = inlined_call_operand.vmem [shape: f32[8,1,32], index: 4, kind: input, shape index: {}]   ;;  %s1928_s5 = inlined_call_operand.vmem [shape: f32[8,6,32], index: 5, kind: input, shape index: {}]   ;;  %s1929_s6 = inlined_call_operand.vmem [shape: f32[3,32,32], index: 6, kind: input, shape index: {}]   ;;  %s1930_s7 = inlined_call_operand.vmem [shape: f32[32,32], index: 7, kind: input, shape index: {}]   ;;  %s1931_s8 = inlined_call_operand.vmem [shape: f32[3,32,32], index: 8, kind: input, shape index: {}]   ;;  %s1932_s9 = inlined_call_operand.vmem [shape: f32[8,1,32], index: 9, kind: output, shape index: {0}]   ;;  %s1933_s10 = inlined_call_operand.vmem [shape: f32[8,1,32], index: 10, kind: output, shape index: {1}]   ;;  %s1934_s1 = inlined_call_operand.vmem [shape: s32[8,2], index: 1, kind: input, shape index: {}]  }
   0x1   :  { %s16_s15 = sshll.u32 %s1924_s0, 4  ;;  %s20_s18 = sshll.u32 %s1934_s1, 4  ;;  %s17_s15 = int_to_ptr.vmem [resolvable:$true] %s16_s15  ;;  %s21_s18 = int_to_ptr.vmem [resolvable:$true] %s20_s18 }
   0x2   :  { %s1561_s19 = scalar_lea.vmem %s17_s15, 16  ;;  %p1566_p1 = scmp.lt.s32.totalorder %s17_s15, %s17_s15 }
   0x3   :  { %p1562_p0 = scmp.ne.s32.totalorder %s17_s15, %s1561_s19  ;;  %p1567_p2 = scmp.lt.s32.totalorder %s1561_s19, %s1561_s19 }
   0x5   :  { %p1568_p3 = por %p1567_p2, %p1566_p1 }
   0x7   :  { %p1569_p4 = pnand %p1568_p3, %p1562_p0 }
   0x9   :  { %1572 = shalt.err (!%p1569_p4)  }
   0xa   :  { %s1595_s20 = smov [#allocation6]   ;;  %s1573_s21 = scalar_lea.vmem %s21_s18, 128 }
   0xb   :  { %19 = dma.vmem_to_smem %s17_s15, 16, %s1595_s20, [#allocation5] }
   0xc   :  { %p1574_p5 = scmp.ne.s32.totalorder %s21_s18, %s1573_s21  ;;  %p1578_p6 = scmp.lt.s32.totalorder %s21_s18, %s21_s18 }
   0xd   :  { %p1579_p7 = scmp.lt.s32.totalorder %s1573_s21, %s1573_s21 }
   0xf   :  { %p1580_p8 = por %p1579_p7, %p1578_p6 }
  0x11   :  { %p1581_p9 = pnand %p1580_p8, %p1574_p5 }
  0x13   :  { %1584 = shalt.err (!%p1581_p9)  }
  0x14   :  { %s1596_s0 = smov [#allocation7]  }
  0x15   :  { %23 = dma.vmem_to_smem %s21_s18, 128, %s1596_s0, [#allocation5] }
  0x16   :  { %1589 = dma.done.wait [#allocation5], 144 }
  0x17   :  { %1590 = vsyncadd [#allocation5], 4294967152 }
  0x18   :  { %25 = sfence }
  0x19   :  { %s1661_s1 = smov 0  }
  0x1a LB: > { %s1667_s22 = sadd.s32 4294967295, %s1593_s1   ;;  %p1341_p10 = scmp.ge.s32.totalorder %s1593_s1, 1  ;;  %s1593_s1 = sphi %s1661_s1, %s31_s1  }
  0x1b   : > { %p293_p11 = scmp.lt.s32.totalorder %s1593_s1, 9 }
  0x1d   : > { %p294_p12 = pnand %p1341_p10, %p293_p11 }
  0x1e   : > { %p334_p13 = scmp.lt.s32.totalorder (!%p294_p12), %s1667_s22, 7  ;;  %p1344_p0 = scmp.ne.s32.totalorder (!%p294_p12), %s1667_s22, 0 }
  0x1f   : > { %297 = sbr.rel (%p294_p12) target bundleno = 990 (0x3de), region = 48 }
  0x24   : > { %s1673_s23 = scalar_select %p334_p13, %s1667_s22, 7 }
  0x25   : > { %354 = sbr.rel (%p1344_p0) target bundleno = 45 (0x2d), region = 52 }
  0x26   : > { %s1342_s24 = sshll.u32 %s1673_s23, 2  ;;  %s340_s27 = scalar_lea.vmem %s1927_s4, %s1673_s23 }
  0x27   : > { %s1683_s30 = scalar_lea.vmem %s1926_s3, %s1342_s24  ;;  %s1343_s11 = sshll.u32 %s1673_s23, 3 }
  0x28   : > { %s1689_s14 = scalar_lea.vmem %s1928_s5, %s1343_s11  ;;  %s347_s17 = scalar_lea.vmem %s1932_s9, %s1673_s23 }
  0x29   : > { %s350_s20 = scalar_lea.vmem %s1933_s10, %s1673_s23 }
  0x2a   : > { %v355_v0 = vld [vmem:[%s1925_s2] sm:$0x1]  ;;  %vm356_vm0 = vcmask 253952   ;;  %v358_v1 = vld [vmem:[%s1925_s2 + $0x1] sm:$0x1]  ;;  %vm360_vm1 = vcmask 261120  }
  0x2b   : > { %357 = vst.msk [vmem:[#allocation2] sm:$0x1] %vm356_vm0, %v355_v0  ;;  %359 = vst.msk [vmem:[#allocation3] sm:$0x1] %vm356_vm0, %v358_v1  ;;  %v1597_v2 = vmov 0.0  }
  0x2c   : > { %361 = vst.msk [vmem:[#allocation4] sm:$0xff] %vm360_vm1, %v1597_v2  ;;  %362 = vst.msk [vmem:[#allocation4 + $0x8] sm:$0xff] %vm360_vm1, %v1597_v2 }
  0x2d PF: > { %v1350_v3 = vld [vmem:[%s1929_s6 + $0x38] sm:$0xff]  ;;  %v616_v4 = vlaneseq  ;;  %v1598_v5 = vmov 0.0   ;;  %v1349_v6 = vld [vmem:[%s1929_s6 + $0x30] sm:$0xff]  ;;  %vm1599_vm2 = vmmov 0   ;;  %s1358_s12 = sshll.u32 %s1667_s22, 7  ;;  %v1348_v7 = vld [vmem:[%s1929_s6 + $0x28] sm:$0xff] }
  0x2e   : > { %1438 = vmatprep.subr.mxu1 %v1598_v5  ;;  %1446 = vmatprep.mubr.msk.f32.mxu1 %vm1599_vm2, %v1598_v5  ;;  %s621_s13 = sld [smem:[#allocation7 + %s1358_s12]]  ;;  %s629_s15 = sadd.s32 1, %s1358_s12  ;;  %v1347_v9 = vld [vmem:[%s1929_s6 + $0x20] sm:$0xff]  ;;  %vm370_vm3 = vcmask 261120   ;;  %vm640_vm10 = vcmask 130048   ;;  %v722_v19 = vld [vmem:[%s1930_s7 + $0x18] sm:$0xff] }
  0x2f   : > { %1439 = vmatpush3.msra.mxu1 %v1350_v3  ;;  %1427 = vmatprep.subr.mxu0 %v1598_v5  ;;  %v1721_v8 = vshrl.u32 %v616_v4, 7  ;;  %s630_s19 = sld [smem:[#allocation7 + %s629_s15]]  ;;  %v1729_v10 = vand.u32 127, %v616_v4  ;;  %v721_v20 = vld [vmem:[%s1930_s7 + $0x10] sm:$0xff]  ;;  %v720_v21 = vld [vmem:[%s1930_s7 + $0x8] sm:$0xff]  ;;  %v719_v22 = vld [vmem:[%s1930_s7] sm:$0xff] }
  0x30   : > { %1440 = vmatprep.subr.mxu1 %v1598_v5  ;;  %1435 = vmatprep.mubr.msk.f32.mxu0 %vm1599_vm2, %v1598_v5  ;;  %v369_v23 = vld [vmem:[%s1929_s6 + $0x18] sm:$0xff]  ;;  %v368_v24 = vld [vmem:[%s1929_s6 + $0x10] sm:$0xff]  ;;  %v367_v25 = vld [vmem:[%s1929_s6 + $0x8] sm:$0xff]  ;;  %vm714_vm11 = vcmask 123904   ;;  %vm814_vm12 = vcmask 254976   ;;  %vm868_vm13 = vcmask 256002  }
  0x31   : > { %1441 = vmatpush3.msra.mxu1 %v1349_v6  ;;  %vm622_vm4 = vcmp.eq.s32.totalorder %v1721_v8, 0  ;;  %vm631_vm5 = vcmp.eq.s32.totalorder %v1721_v8, 1  ;;  %1428 = vmatpush3.msra.mxu0 %v369_v23  ;;  %v366_v26 = vld [vmem:[%s1929_s6] sm:$0xff]  ;;  %v1356_v27 = vld [vmem:[%s1929_s6 + $0x58] sm:$0xff]  ;;  %v1355_v28 = vld [vmem:[%s1929_s6 + $0x50] sm:$0xff]  ;;  %vm866_vm14 = vcmask 254977  }
  0x32   : > { %1442 = vmatprep.subr.mxu1 %v1598_v5  ;;  %v1731_v11 = vld [vmem:[#allocation2] sm:$0x1]  ;;  %1429 = vmatprep.subr.mxu0 %v1598_v5  ;;  %v1354_v30 = vld [vmem:[%s1929_s6 + $0x48] sm:$0xff]  ;;  %v364_v48 = vld [vmem:[#allocation3] sm:$0x1]  ;;  %vm1154_vm0 = vcmask 15360  }
  0x33   : > { %1443 = vmatpush3.msra.mxu1 %v1348_v7  ;;  %v1734_v12 = vld [vmem:[#allocation4 + $0x8] sm:$0xff]  ;;  %v1741_v14 = vld [vmem:[#allocation4] sm:$0xff]  ;;  %1430 = vmatpush3.msra.mxu0 %v368_v24  ;;  %v876_v59 = vld [vmem:[%s1931_s8 + $0x18] sm:$0xff] }
  0x34   : > { %1444 = vmatprep.subr.mxu1 %v1598_v5  ;;  %v623_v13 = vstv %s621_s13  ;;  %1431 = vmatprep.subr.mxu0 %v1598_v5  ;;  %v1353_v31 = vld [vmem:[%s1929_s6 + $0x40] sm:$0xff]  ;;  %v1370_v60 = vld [vmem:[%s1931_s8 + $0x38] sm:$0xff]  ;;  %v875_v61 = vld [vmem:[%s1931_s8 + $0x10] sm:$0xff] }
  0x35   : > { %1445 = vmatpush3.msra.mxu1 %v1347_v9  ;;  %vm624_vm6 = vcmp.eq.s32.totalorder %v1729_v10, %v623_v13  ;;  %v632_v15 = vstv %s630_s19  ;;  %1432 = vmatpush3.msra.mxu0 %v367_v25  ;;  %v1820_v36 = vld [vmem:[%s1683_s30] sm:$0x7]  ;;  %v1369_v62 = vld [vmem:[%s1931_s8 + $0x30] sm:$0xff]  ;;  %v874_v63 = vld [vmem:[%s1931_s8 + $0x8] sm:$0xff]  ;;  %s1378_s30 = sshll.u32 %s1667_s22, 1 }
  0x36   : > { %1447 = vmatmul.mubr.msk.f32.vlgmr.msra.gmra.mxu1 %vm370_vm3, %v1731_v11  ;;  %1460 = vmatprep.subr.mxu1 %v1598_v5  ;;  %vm625_vm7 = vmand %vm622_vm4, %vm624_vm6  ;;  %vm633_vm8 = vcmp.eq.s32.totalorder %v1729_v10, %v632_v15  ;;  %v1368_v0 = vld [vmem:[%s1931_s8 + $0x28] sm:$0xff]  ;;  %v873_v1 = vld [vmem:[%s1931_s8] sm:$0xff] }
  0x37   : > { %1461 = vmatpush3.msra.mxu1 %v1734_v12  ;;  %1464 = vmatprep.mubr.msk.f32.mxu1 %vm1599_vm2, %v1598_v5  ;;  %v1359_v16 = vsel %vm625_vm7, 1.0, %v1598_v5  ;;  %vm634_vm9 = vmand %vm631_vm5, %vm633_vm8  ;;  %v1367_v2 = vld [vmem:[%s1931_s8 + $0x20] sm:$0xff] }
  0x38   : > { %1462 = vmatprep.subr.mxu1 %v1598_v5  ;;  %v1360_v17 = vsel %vm634_vm9, 1.0, %v1598_v5  ;;  %1433 = vmatprep.subr.mxu0 %v1598_v5  ;;  %v1363_v3 = vld [vmem:[%s340_s27] ss:$0 sm:$0xff]  ;;  %s848_s27 = sld [smem:[#allocation6 + %s1667_s22]] }
  0x39   : > { %1463 = vmatpush3.msra.mxu1 %v1741_v14  ;;  %v637_v18 = vadd.f32 %v1360_v17, %v1359_v16  ;;  %1434 = vmatpush3.msra.mxu0 %v366_v26 }
  0x3a   : > { %1467 = vmatprep.subr.mxu1 %v1598_v5  ;;  %1436 = vmatmul.mubr.msk.f32.vlgmr.msra.gmra.mxu0 %vm370_vm3, %v1731_v11 }
  0x3b   : > { %1465 = vmatmul.mubr.msk.f32.vlgmr.msra.gmra.mxu1 %vm640_vm10, %v637_v18  ;;  %1449 = vmatprep.subr.mxu0 %v1598_v5  ;;  %v715_v29 = vsel %vm714_vm11, %v637_v18, 0.0 }
  0x3c   : > { %1468 = vmatpush3.msra.mxu1 %v722_v19  ;;  %1475 = vmatprep.mubr.msk.f32.mxu1 %vm1599_vm2, %v1598_v5 }
  0x3d   : > { %1469 = vmatprep.subr.mxu1 %v1598_v5  ;;  %1457 = vmatprep.mubr.msk.f32.mxu0 %vm1599_vm2, %v1598_v5 }
  0x3e   : > { %1470 = vmatpush3.msra.mxu1 %v721_v20  ;;  %1450 = vmatpush3.msra.mxu0 %v1356_v27  ;;  %p849_p1 = scmp.gt.s32.totalorder %s848_s27, 0 }
  0x3f   : > { %1471 = vmatprep.subr.mxu1 %v1598_v5  ;;  %1451 = vmatprep.subr.mxu0 %v1598_v5 }
  0x40   : > { %1472 = vmatpush3.msra.mxu1 %v720_v21  ;;  %716 = vadd.xlane.f32.xlu0 %v715_v29  ;;  %s850_s21 = scalar_select %p849_p1, 1, 0 }
  0x41   : > { %1473 = vmatprep.subr.mxu1 %v1598_v5  ;;  %1452 = vmatpush3.msra.mxu0 %v1355_v28 }
  0x42   : > { %1474 = vmatpush3.msra.mxu1 %v719_v22  ;;  %1453 = vmatprep.subr.mxu0 %v1598_v5  ;;  %s851_s0 = scvt.s32.f32 %s850_s21 }
  0x43   : > { %1489 = vmatprep.subr.mxu1 %v1598_v5  ;;  %1454 = vmatpush3.msra.mxu0 %v1354_v30 }
  0x44   : > { %1455 = vmatprep.subr.mxu0 %v1598_v5  ;;  %s854_s24 = ssub.f32 1.0, %s851_s0 }
  0x45   : > { %1456 = vmatpush3.msra.mxu0 %v1353_v31 }
  0x46   : > { %1458 = vmatmul.mubr.msk.f32.vlgmr.msra.gmra.mxu0 %vm370_vm3, %v1731_v11  ;;  %1478 = vmatprep.subr.mxu0 %v1598_v5 }
  0x47   : > { %1486 = vmatprep.mubr.msk.f32.mxu0 %vm1599_vm2, %v1598_v5  ;;  %1479 = vmatpush3.msra.mxu0 %v876_v59  ;;  %v1373_v59 = vld [vmem:[%s1931_s8 + $0x40] sm:$0xff] }
  0x48   : > { %1480 = vmatprep.subr.mxu0 %v1598_v5 }
  0x49   : > { %1481 = vmatpush3.msra.mxu0 %v875_v61 }
  0x4a   : > { %1482 = vmatprep.subr.mxu0 %v1598_v5 }
  0x4b   : > { %1483 = vmatpush3.msra.mxu0 %v874_v63  ;;  %v953_v63 = vsub.s32 0, %v1721_v8 }
  0x4c   : > { %1484 = vmatprep.subr.mxu0 %v1598_v5 }
  0x4d   : > { %1485 = vmatpush3.msra.mxu0 %v873_v1 }
  0x4e   : > { %1500 = vmatprep.subr.mxu0 %v1598_v5 }
  0xc9   : > { %v717_v17 = vpop.xlane.xlu0 %716 }
  0xf6   : > { %v1811_v32 = vpop.f32.mrf.mxu1 }
  0xf7   : > { %v527_v27 = vrot.slane %v1811_v32, 7  ;;  %v855_v32 = vstv %s854_s24 }
  0xf8   : > { %v1448_v33 = vpop.f32.mrf.mxu1 }
  0xf9   : > { %v529_v31 = vadd.f32 %v527_v27, %v1820_v36  ;;  %v1142_v27 = vadd.s32 8, %v1721_v8 }
  0xfa   : > { %v440_v37 = vpop.f32.mrf.mxu0 }
  0xfb   : > { %v1813_v34 = vpop.f32.mrf.mxu1  ;;  %v444_v38 = vadd.f32 %v440_v37, %v1820_v36 }
  0xfc   : > { %1476 = vmatmul.mubr.msk.f32.vlgmr.msra.gmra.mxu1 %vm370_vm3, %v1813_v34  ;;  %v1437_v39 = vpop.f32.mrf.mxu0 }
  0xfd   : > { %v1466_v35 = vpop.f32.mrf.mxu1  ;;  %1497 = vmatprep.mubr.msk.f32.mxu1 %vm1599_vm2, %v1598_v5  ;;  %v1346_v40 = vmul.f32 -1.442695, %v444_v38  ;;  %1490 = vmatpush3.msra.mxu1 %v1370_v60  ;;  %v1352_v38 = vmul.f32 -1.442695, %v529_v31  ;;  %v1144_v60 = vstv %s1378_s30 }
  0xfe   : > { %1491 = vmatprep.subr.mxu1 %v1598_v5  ;;  %v1145_v61 = vadd.s32 %v1144_v60, %v1729_v10 }
  0xff   : > { %1529 = vpow2.f32 %v1346_v40  ;;  %1492 = vmatpush3.msra.mxu1 %v1369_v62 }
 0x100   : > { %1493 = vmatprep.subr.mxu1 %v1598_v5  ;;  %vm1146_vm15 = vcmp.eq.s32.totalorder %v1721_v8, %v1145_v61  ;;  %vm1147_vm1 = vcmp.eq.s32.totalorder %v1142_v27, %v1145_v61 }
 0x101   : > { %1494 = vmatpush3.msra.mxu1 %v1368_v0  ;;  %v1379_v62 = vsel %vm1146_vm15, 1.0, %v1598_v5  ;;  %v872_v0 = vld [vmem:[%s1689_s14] sm:$0x3f] }
 0x102   : > { %1495 = vmatprep.subr.mxu1 %v1598_v5 }
 0x103   : > { %1496 = vmatpush3.msra.mxu1 %v1367_v2 }
 0x106   : > { %v607_v41 = vpop.f32.mrf.mxu0 }
 0x107   : > { %v612_v42 = vrot.slane %v607_v41, 6 }
 0x108   : > { %v1459_v44 = vpop.f32.mrf.mxu0 }
 0x109   : > { %v614_v46 = vadd.f32 %v612_v42, %v1820_v36  ;;  %v852_v44 = vstv %s851_s0 }
 0x10c   : > { %v1530_v43 = vpop.eup %1529 }
 0x10d   : > { %v448_v45 = vadd.f32 1.0, %v1530_v43 }
 0x10f   : > { %1531 = vrcp.f32 %v448_v45 }
 0x110   : > { %1533 = vtanh.f32 %v614_v46 }
 0x11c   : > { %v1532_v47 = vpop.eup %1531 }
 0x11d   : > { %v1534_v49 = vpop.eup %1533  ;;  %v841_v50 = vsub.f32 1.0, %v1532_v47  ;;  %v809_v51 = vmul.f32 1.442695, %v1532_v47 }
 0x11e   : > { %v844_v52 = vrot.slane %v1534_v49, 2 }
 0x11f   : > { %v842_v53 = vmul.f32 %v841_v50, %v364_v48  ;;  %1535 = vpow2.f32 %v809_v51 }
 0x120   : > { %v846_v54 = vmul.f32 %v1532_v47, %v844_v52 }
 0x122   : > { %v1824_v55 = vadd.f32 %v846_v54, %v842_v53 }
 0x124   : > { %v856_v36 = vmul.f32 %v855_v32, %v1824_v55 }
 0x126   : > { %v858_v48 = vrot.slane %v856_v36, 6 }
 0x12c   : > { %v1536_v56 = vpop.eup %1535 }
 0x12d   : > { %v825_v57 = vrot.slane %v1536_v56, 6 }
 0x12f   : > { %v1826_v58 = vmul.f32 %v1534_v49, %v825_v57  ;;  %v1375_v57 = vld [vmem:[%s1931_s8 + $0x50] sm:$0xff] }
 0x1bc   : > { %v792_v4 = vpop.f32.mrf.mxu1 }
 0x1bd   : > { %v802_v6 = vadd.f32 %v1363_v3, %v792_v4 }
 0x1be   : > { %v1477_v7 = vpop.f32.mrf.mxu1 }
 0x1bf   : > { %v1364_v9 = vmul.f32 -1.442695, %v802_v6 }
 0x1c1   : > { %1537 = vpow2.f32 %v1364_v9 }
 0x1ce   : > { %v1538_v11 = vpop.eup %1537 }
 0x1cf   : > { %v806_v13 = vadd.f32 1.0, %v1538_v11 }
 0x1d1   : > { %1539 = vrcp.f32 %v806_v13 }
 0x1de   : > { %v1540_v15 = vpop.eup %1539 }
 0x1df   : > { %v811_v16 = vmul.f32 1.442695, %v1540_v15 }
 0x1e1   : > { %1541 = vpow2.f32 %v811_v16 }
 0x1ee   : > { %v1542_v18 = vpop.eup %1541 }
 0x1ef   : > { %v813_v19 = vmul.f32 %v1542_v18, %v717_v17 }
 0x1f1   : > { %v815_v20 = vsel %vm814_vm12, %v813_v19, 0.0  ;;  %v828_v21 = vmul.f32 %v813_v19, %v1813_v34 }
 0x1f2   : > { %v816_v22 = vrot.slane %v815_v20, 4 }
 0x1f3   : > { %v829_v23 = vsel %vm814_vm12, %v828_v21, 0.0 }
 0x1f4   : > { %v817_v24 = vadd.f32 %v816_v22, %v815_v20  ;;  %v830_v26 = vrot.slane %v829_v23, 4 }
 0x1f6   : > { %v818_v25 = vrot.slane %v817_v24, 2  ;;  %v831_v30 = vadd.f32 %v830_v26, %v829_v23 }
 0x1f8   : > { %v819_v28 = vadd.f32 %v818_v25, %v817_v24  ;;  %v832_v37 = vrot.slane %v831_v30, 2  ;;  %v1131_v24 = vsub.s32 2, %v1721_v8 }
 0x1fa   : > { %v820_v29 = vrot.slane %v819_v28, 1  ;;  %v833_v34 = vadd.f32 %v832_v37, %v831_v30  ;;  %v1380_v37 = vsel %vm1147_vm1, 1.0, %v1598_v5 }
 0x1fc   : > { %v821_v33 = vadd.f32 %v820_v29, %v819_v28  ;;  %v834_v39 = vrot.slane %v833_v34, 1 }
 0x1fe   : > { %v822_v35 = vadd.f32 %v1536_v56, %v821_v33  ;;  %v835_v40 = vadd.f32 %v834_v39, %v833_v34  ;;  %v1376_v56 = vld [vmem:[%s1931_s8 + $0x58] sm:$0xff] }
 0x200   : > { %1543 = vrcp.f32 %v822_v35  ;;  %v836_v42 = vadd.f32 %v835_v40, %v1826_v58  ;;  %v1374_v58 = vld [vmem:[%s1931_s8 + $0x48] sm:$0xff] }
 0x201   : > { %1545 = vpow2.f32 %v1352_v38 }
 0x20d   : > { %v1544_v41 = vpop.eup %1543 }
 0x20e   : > { %v838_v43 = vrot.slane %v1544_v41, 6  ;;  %v1546_v46 = vpop.eup %1545 }
 0x20f   : > { %v533_v49 = vadd.f32 1.0, %v1546_v46 }
 0x210   : > { %v840_v45 = vmul.f32 %v838_v43, %v836_v42 }
 0x212   : > { %v853_v47 = vmul.f32 %v852_v44, %v840_v45 }
 0x214   : > { %v1870_v50 = vadd.f32 %v858_v48, %v853_v47 }
 0x216   : > { %869 = vst.msk [vmem:[#allocation3 - $0x2] sm:$0x4] %vm868_vm13, %v1870_v50  ;;  %871 = vst.msk [vmem:[%s350_s20 - $0x2] sm:$0x4] %vm868_vm13, %v1870_v50  ;;  %1547 = vtanh.f32 %v1870_v50  ;;  %v1132_v30 = vrot.slane %v1870_v50, %v1131_v24 }
 0x217   : > { %1549 = vrcp.f32 %v533_v49 }
 0x223   : > { %v1548_v51 = vpop.eup %1547 }
 0x224   : > { %v863_v52 = vrot.slane %v1548_v51, 1  ;;  %v1550_v53 = vpop.eup %1549 }
 0x226   : > { %v865_v54 = vmul.f32 %v1550_v53, %v863_v52 }
 0x228   : > { %867 = vst.msk [vmem:[#allocation2 - $0x1] sm:$0x2] %vm866_vm14, %v865_v54  ;;  %870 = vst.msk [vmem:[%s347_s17 - $0x1] sm:$0x2] %vm866_vm14, %v865_v54  ;;  %v878_v55 = vrot.slane %v865_v54, 1 }
 0x22a   : > { %1487 = vmatmul.mubr.msk.f32.vlgmr.msra.gmra.mxu0 %vm370_vm3, %v878_v55  ;;  %1498 = vmatmul.mubr.msk.f32.vlgmr.msra.gmra.mxu1 %vm370_vm3, %v878_v55 }
 0x22b   : > { %1501 = vmatpush3.msra.mxu0 %v1376_v56  ;;  %1508 = vmatprep.mubr.msk.f32.mxu0 %vm1599_vm2, %v1598_v5  ;;  %vm1161_vm2 = vcmask 1041408  }
 0x22c   : > { %1502 = vmatprep.subr.mxu0 %v1598_v5  ;;  %1513 = vmatprep.mubr.msk.f32.mxu1 %vm1154_vm0, %v1379_v62 }
 0x22d   : > { %1503 = vmatpush3.msra.mxu0 %v1375_v57 }
 0x22e   : > { %1504 = vmatprep.subr.mxu0 %v1598_v5 }
 0x22f   : > { %1505 = vmatpush3.msra.mxu0 %v1374_v58 }
 0x230   : > { %1506 = vmatprep.subr.mxu0 %v1598_v5 }
 0x231   : > { %1507 = vmatpush3.msra.mxu0 %v1373_v59 }
 0x232   : > { %1509 = vmatmul.mubr.msk.f32.vlgmr.msra.gmra.mxu0 %vm370_vm3, %v878_v55 }
 0x2ea   : > { %v947_v1 = vpop.f32.mrf.mxu0  ;;  %v1033_v2 = vpop.f32.mrf.mxu1 }
 0x2eb   : > { %v954_v3 = vrot.slane %v947_v1, %v953_v63  ;;  %v1040_v4 = vrot.slane %v1033_v2, %v953_v63 }
 0x2ec   : > { %v1488_v6 = vpop.f32.mrf.mxu0  ;;  %v1499_v7 = vpop.f32.mrf.mxu1 }
 0x2ed   : > { %v955_v9 = vadd.f32 %v954_v3, %v872_v0  ;;  %v1041_v11 = vadd.f32 %v1040_v4, %v872_v0 }
 0x2ef   : > { %v1366_v13 = vmul.f32 -1.442695, %v955_v9  ;;  %v1372_v10 = vmul.f32 -1.442695, %v1041_v11 }
 0x2f1   : > { %1551 = vpow2.f32 %v1366_v13 }
 0x2f2   : > { %1553 = vpow2.f32 %v1372_v10  ;;  %v1119_v15 = vpop.f32.mrf.mxu0 }
 0x2f3   : > { %v1126_v17 = vrot.slane %v1119_v15, %v953_v63 }
 0x2f4   : > { %v1510_v16 = vpop.f32.mrf.mxu0 }
 0x2f5   : > { %v1127_v18 = vadd.f32 %v1126_v17, %v872_v0 }
 0x2f7   : > { %1555 = vtanh.f32 %v1127_v18 }
 0x2fe   : > { %v1552_v19 = vpop.eup %1551 }
 0x2ff   : > { %v1554_v20 = vpop.eup %1553  ;;  %v959_v21 = vadd.f32 1.0, %v1552_v19 }
 0x300   : > { %v1045_v22 = vadd.f32 1.0, %v1554_v20 }
 0x301   : > { %1557 = vrcp.f32 %v959_v21 }
 0x302   : > { %1559 = vrcp.f32 %v1045_v22 }
 0x304   : > { %v1556_v23 = vpop.eup %1555 }
 0x305   : > { %v1135_v26 = vrot.slane %v1556_v23, 2 }
 0x30e   : > { %v1558_v25 = vpop.eup %1557 }
 0x30f   : > { %v1560_v28 = vpop.eup %1559  ;;  %v1133_v33 = vmul.f32 %v1558_v25, %v1132_v30 }
 0x310   : > { %v1137_v29 = vmul.f32 %v1560_v28, %v1135_v26 }
 0x312   : > { %v1139_v31 = vrot.slane %v1137_v29, 2 }
 0x314   : > { %v1141_v35 = vadd.f32 %v1139_v31, %v1133_v33 }
 0x316   : > { %1511 = vmatprep.subr.msk.mxu1 %vm1161_vm2, %v1141_v35 }
 0x317   : > { %1512 = vmatpush3.msk.msra.mxu1 %vm1161_vm2, %v1141_v35 }
 0x318   : > { %1514 = vmatmul.mubr.msk.f32.vlgmr.msra.gmra.mxu1 %vm1154_vm0, %v1380_v37 }
 0x3d8   : > { %v1515_v38 = vpop.f32.mrf.mxu1 }
 0x3d9   : > { %v1241_v34 = vadd.f32 %v1515_v38, %v1734_v12 }
 0x3da   : > { %v1231_v39 = vpop.f32.mrf.mxu1 }
 0x3db   : > { %1243 = vst.msk [vmem:[#allocation4 + $0x8] sm:$0xff] %vm370_vm3, %v1241_v34  ;;  %v1240_v8 = vadd.f32 %v1231_v39, %v1741_v14 }
 0x3dd   : > { %1242 = vst.msk [vmem:[#allocation4] sm:$0xff] %vm370_vm3, %v1240_v8 }
 0x3de PF: > { %s31_s1 = sadd.s32 1, %s1593_s1  }
 0x3df   : > { %p28_p2 = scmp.ge.s32.totalorder %s31_s1, 10  }
 0x3e1   :  { %30 = sbr.rel (!%p28_p2) target bundleno = 26 (0x1a), region = 104 }

</bundles_post_ra>
